<compile_context>
chip_gen: v7x
topology: tpu7x:2x2x1
jax: 0.10.0
libtpu: 0.0.40
codegen_flags: <defaults>
</compile_context>

<pallas_src>
import numpy as np
import jax
import jax.numpy as jnp
from jax.experimental import pallas as pl
from jax.experimental.pallas import tpu as pltpu

_BN_EPS = 1e-5
_LANE_DENSE_MIN_B = 128     # below this keep the natural [B, 1] output store


def _round_up(n, m):
    return ((n + m - 1) // m) * m


# ----------------------------------------------------------------------------
# Kernel
# ----------------------------------------------------------------------------
def _critic_kernel(state_ref, action_ref, wslab_ref, pslab_ref, out_ref, xa_ref):
    Bt, S = state_ref.shape
    A = action_ref.shape[1]
    K2 = xa_ref.shape[1]                 # padded fc2 contraction dim (= 2 * input_layer)
    F1 = K2 // 2                         # input_layer (128)
    S_pad = wslab_ref.shape[0] - K2      # W1 row block (16-aligned)

    # Packed small-parameter slab (one tiny DMA): rows
    #   [0] -> b2   [1] -> w3 (as a row)   [2] -> [gamma | beta]   [3,0] -> b3
    p = pslab_ref[...]

    # Stage the action half of the fc2 LHS first (independent of x, so the LLO
    # scheduler can overlap these stores with the fcs1 matmul / BN below).
    xa_ref[:, F1:] = jnp.zeros((Bt, K2 - F1), jnp.bfloat16)
    xa_ref[:, F1:F1 + A] = action_ref[...].astype(jnp.bfloat16)

    # --- fcs1: bf16 MXU operands, f32 accumulate (b1 cancelled by BN mean) ----
    w1 = wslab_ref[0:S, 0:F1]
    x = jnp.dot(state_ref[...].astype(jnp.bfloat16), w1,
                preferred_element_type=jnp.float32)

    # --- BatchNorm1d (training mode), centered batch stats, gamma folded -----
    m = jnp.mean(x, axis=0, keepdims=True)
    xc = x - m
    var = jnp.mean(xc * xc, axis=0, keepdims=True)       # centered -> never < 0
    gamma = p[2:3, 0:F1]
    beta = p[2:3, F1:2 * F1]
    scale = gamma * jax.lax.rsqrt(var + _BN_EPS)
    xr = jnp.maximum(xc * scale + beta, 0.0)              # ReLU fused

    # --- fc2: concat folded into ONE K=256 MXU pass (zero-padded W2 rows) -----
    xa_ref[:, 0:F1] = xr.astype(jnp.bfloat16)
    w2 = wslab_ref[S_pad:S_pad + K2, :]
    h = jnp.dot(xa_ref[...], w2, preferred_element_type=jnp.float32)
    h = jnp.maximum(h + p[0:1, :], 0.0)                    # + b2, ReLU

    # --- fc3 (N=1 head): VPU multiply + cross-lane reduce, skip the MXU pass --
    q = jnp.sum(h * p[1:2, :], axis=1, keepdims=True) + p[3:4, 0:1]   # [Bt, 1]

    if out_ref.shape == (1, Bt) and Bt > 1:
        # Lane-dense store for large batches ([B,1] would emit B/8 masked
        # vst.msk partial stores; [1,B] is dense). Relayout cost: one small
        # sublane->lane transpose per 128 rows.
        out_ref[...] = q.reshape(1, Bt)
    else:
        out_ref[...] = q


def _full_spec(shape):
    # Single program (no grid): whole array resident in VMEM.
    return pl.BlockSpec(shape, lambda: (0,) * len(shape))


def critic_forward(state, action, packed):
    """state: [B, state_size] f32, action: [B, action_size] f32 -> [B, 1] f32."""
    B, S = state.shape
    wslab, pslab = packed
    S_pad = _round_up(S, 16)
    K2 = wslab.shape[0] - S_pad                       # padded fc2 K (2 * 128)

    lane_dense = B >= _LANE_DENSE_MIN_B
    out_shape = (1, B) if lane_dense else (B, 1)
    out_struct = jax.ShapeDtypeStruct(out_shape, jnp.float32)

    args = (state, action, wslab, pslab)              # 4 input DMAs total
    q = pl.pallas_call(
        _critic_kernel,
        out_shape=out_struct,
        in_specs=[_full_spec(a.shape) for a in args],
        out_specs=_full_spec(out_shape),
        scratch_shapes=[pltpu.VMEM((B, K2), jnp.bfloat16)],   # fc2 LHS staging
        compiler_params=pltpu.CompilerParams(vmem_limit_bytes=32 * 1024 * 1024),
    )(*args)
    return q.reshape(B, 1)


# ----------------------------------------------------------------------------
# Parameter init (mirrors Critic.reset_parameters / PyTorch defaults) + packing
# ----------------------------------------------------------------------------
def init_critic_params(key, state_size, action_size,
                       input_layer=128, hidden_1=256):
    """Module-faithful f32 params. Weights stored transposed: [in, out]."""
    ks = jax.random.split(key, 6)

    # hidden_init uses weight.size()[0] == out_features (as written in the module)
    lim1 = 1.0 / np.sqrt(input_layer)
    lim2 = 1.0 / np.sqrt(hidden_1)

    w1 = jax.random.uniform(ks[0], (state_size, input_layer),
                            jnp.float32, -lim1, lim1)
    b1 = jax.random.uniform(ks[1], (1, input_layer), jnp.float32,
                            -1.0 / np.sqrt(state_size), 1.0 / np.sqrt(state_size))

    in2 = input_layer + action_size
    w2 = jax.random.uniform(ks[2], (in2, hidden_1), jnp.float32, -lim2, lim2)
    b2 = jax.random.uniform(ks[3], (1, hidden_1), jnp.float32,
                            -1.0 / np.sqrt(in2), 1.0 / np.sqrt(in2))

    w3 = jax.random.uniform(ks[4], (hidden_1, 1), jnp.float32, -3e-3, 3e-3)
    b3 = jax.random.uniform(ks[5], (1, 1), jnp.float32,
                            -1.0 / np.sqrt(hidden_1), 1.0 / np.sqrt(hidden_1))

    gamma = jnp.ones((1, input_layer), jnp.float32)    # BatchNorm1d weight
    beta = jnp.zeros((1, input_layer), jnp.float32)    # BatchNorm1d bias
    return (w1, b1, gamma, beta, w2, b2, w3, b3)


def pack_critic_params(fparams):
    """Produce the kernel inputs: ONE bf16 weight slab + ONE small f32 slab."""
    (w1, b1, gamma, beta, w2, b2, w3, b3) = fparams
    S, F1 = w1.shape
    H = w2.shape[1]
    A = w2.shape[0] - F1
    assert H == 2 * F1, "packing assumes hidden_1 == 2 * input_layer"
    assert A <= F1, "action_size must fit in the padded fc2 lane block"
    S_pad = _round_up(S, 16)           # bf16 sublane-tile aligned W1 row block
    K2 = 2 * F1

    # bf16 weight slab (one DMA):
    #   rows [0:S],              lanes [0:F1]  -> W1
    #   rows [S_pad:S_pad+F1]                  -> W2 state rows
    #   rows [S_pad+F1:S_pad+F1+A]             -> W2 action rows
    #   rows [S_pad+F1+A:S_pad+K2]             -> zeros (padding for K=256 pass)
    wslab = jnp.zeros((S_pad + K2, H), jnp.float32)
    wslab = wslab.at[:S, :F1].set(w1)
    wslab = wslab.at[S_pad:S_pad + F1, :].set(w2[:F1, :])
    wslab = wslab.at[S_pad + F1:S_pad + F1 + A, :].set(w2[F1:, :])
    wslab = wslab.astype(jnp.bfloat16)

    # f32 small-parameter slab (one tiny DMA).
    pslab = jnp.zeros((8, H), jnp.float32)
    pslab = pslab.at[0, :].set(b2.reshape(H))                  # b2
    pslab = pslab.at[1, :].set(w3.reshape(H))                  # w3 row
    pslab = pslab.at[2, :F1].set(gamma.reshape(F1))            # gamma
    pslab = pslab.at[2, F1:2 * F1].set(beta.reshape(F1))       # beta
    pslab = pslab.at[3, 0].set(jnp.reshape(b3, ()))            # b3

    return (wslab, pslab)


# ----------------------------------------------------------------------------
# References
# ----------------------------------------------------------------------------
def _mirrored_reference(state, action, packed):
    """Pure-JAX math identical to the kernel (same bf16 casts / op order)."""
    wslab, pslab = packed
    B, S = state.shape
    A = action.shape[1]
    S_pad = _round_up(S, 16)
    K2 = wslab.shape[0] - S_pad
    F1 = K2 // 2
    p = pslab

    x = jnp.dot(state.astype(jnp.bfloat16), wslab[0:S, 0:F1],
                preferred_element_type=jnp.float32)
    m = x.mean(0, keepdims=True)
    xc = x - m
    var = (xc * xc).mean(0, keepdims=True)
    scale = p[2:3, :F1] * jax.lax.rsqrt(var + _BN_EPS)
    xr = jnp.maximum(xc * scale + p[2:3, F1:2 * F1], 0.0)

    xa = jnp.zeros((B, K2), jnp.bfloat16)
    xa = xa.at[:, :F1].set(xr.astype(jnp.bfloat16))
    xa = xa.at[:, F1:F1 + A].set(action.astype(jnp.bfloat16))
    h = jnp.dot(xa, wslab[S_pad:S_pad + K2, :], preferred_element_type=jnp.float32)
    h = jnp.maximum(h + p[0:1, :], 0.0)
    return jnp.sum(h * p[1:2, :], axis=1, keepdims=True) + p[3, 0]


def _module_reference(state, action, fparams):
    """Full-f32 reference matching the PyTorch module forward (training mode)."""
    (w1, b1, gamma, beta, w2, b2, w3, b3) = fparams
    x = state @ w1 + b1
    m = x.mean(axis=0, keepdims=True)
    v = ((x - m) ** 2).mean(axis=0, keepdims=True)
    x = (x - m) / jnp.sqrt(v + _BN_EPS) * gamma + beta
    x = jnp.maximum(x, 0.0)
    xa = jnp.concatenate([x, action], axis=1)
    h = jnp.maximum(xa @ w2 + b2, 0.0)
    return h @ w3 + b3


# ----------------------------------------------------------------------------
if __name__ == "__main__":
    B, STATE_SIZE, ACTION_SIZE = 8, 16, 4

    key = jax.random.PRNGKey(0)
    k_state, k_action, k_params = jax.random.split(key, 3)

    state = jax.random.normal(k_state, (B, STATE_SIZE), jnp.float32)
    action = jax.random.normal(k_action, (B, ACTION_SIZE), jnp.float32)

    fparams = init_critic_params(k_params, STATE_SIZE, ACTION_SIZE)
    packed = pack_critic_params(fparams)

    q = jax.block_until_ready(critic_forward(state, action, packed))
    assert q.shape == (B, 1)

    # exact-math mirror (same bf16 casts / op order) -> tight tolerance
    q_mirror = _mirrored_reference(state, action, packed)
    np.testing.assert_allclose(np.asarray(q), np.asarray(q_mirror),
                               rtol=1e-4, atol=1e-4)

    # module-faithful f32 forward -> loose tolerance (intentional bf16 MXU
    # quantization of state / post-BN activations / action / weights)
    q_f32 = _module_reference(state, action, fparams)
    np.testing.assert_allclose(np.asarray(q), np.asarray(q_f32),
                               rtol=5e-2, atol=5e-2)

    print("KERNEL_OK")
</pallas_src>

<mosaic_0001>
module attributes {stable_mosaic.version = 11 : i64} {
  func.func @_critic_kernel(%arg0: memref<8x16xf32, #tpu.memory_space<vmem>>, %arg1: memref<8x4xf32, #tpu.memory_space<vmem>>, %arg2: memref<272x256xbf16, #tpu.memory_space<vmem>>, %arg3: memref<8x256xf32, #tpu.memory_space<vmem>>, %arg4: memref<8x1xf32, #tpu.memory_space<vmem>>, %arg5: memref<8x256xbf16, #tpu.memory_space<vmem>>) attributes {dimension_semantics = [], scalar_prefetch = 0 : i64, scratch_operands = 1 : i64, tpu.core_type = #tpu.core_type<tc>} {
    %c0 = arith.constant 0 : index
    %c0_0 = arith.constant 0 : index
    %0 = vector.load %arg3[%c0, %c0_0] : memref<8x256xf32, #tpu.memory_space<vmem>>, vector<8x256xf32>
    %cst = arith.constant 0.000000e+00 : bf16
    %1 = vector.broadcast %cst : bf16 to vector<8x128xbf16>
    %c0_1 = arith.constant 0 : index
    %c128 = arith.constant 128 : index
    %2 = vector.load %arg5[%c0_1, %c128] : memref<8x256xbf16, #tpu.memory_space<vmem>>, vector<8x128xbf16>
    tpu.vector_store %arg5[%c0_1, %c128], %1 {strides = array<i32>} : memref<8x256xbf16, #tpu.memory_space<vmem>>, vector<8x128xbf16>,
    %c0_2 = arith.constant 0 : index
    %c0_3 = arith.constant 0 : index
    %3 = vector.load %arg1[%c0_2, %c0_3] : memref<8x4xf32, #tpu.memory_space<vmem>>, vector<8x4xf32>
    %4 = arith.truncf %3 : vector<8x4xf32> to vector<8x4xbf16>
    %c0_4 = arith.constant 0 : index
    %c128_5 = arith.constant 128 : index
    %5 = vector.load %arg5[%c0_4, %c128_5] : memref<8x256xbf16, #tpu.memory_space<vmem>>, vector<8x4xbf16>
    tpu.vector_store %arg5[%c0_4, %c128_5], %4 {strides = array<i32>} : memref<8x256xbf16, #tpu.memory_space<vmem>>, vector<8x4xbf16>,
    %c0_6 = arith.constant 0 : index
    %c0_7 = arith.constant 0 : index
    %6 = vector.load %arg2[%c0_6, %c0_7] : memref<272x256xbf16, #tpu.memory_space<vmem>>, vector<16x128xbf16>
    %c0_8 = arith.constant 0 : index
    %c0_9 = arith.constant 0 : index
    %7 = vector.load %arg0[%c0_8, %c0_9] : memref<8x16xf32, #tpu.memory_space<vmem>>, vector<8x16xf32>
    %8 = arith.truncf %7 : vector<8x16xf32> to vector<8x16xbf16>
    %cst_10 = arith.constant dense<0.000000e+00> : vector<8x128xf32>
    %9 = tpu.matmul %8, %6, %cst_10 {dimension_numbers = #tpu.dot_dimension_numbers<[1], [0], [0], [1], [0, 0, 1, 1], [], []>} : vector<8x16xbf16>, vector<16x128xbf16>, vector<8x128xf32> -> vector<8x128xf32>
    %cst_11 = arith.constant dense<0.000000e+00> : vector<128xf32>
    %10 = vector.multi_reduction <add>, %9, %cst_11 [0] : vector<8x128xf32> to vector<128xf32>
    %11 = vector.shape_cast %10 : vector<128xf32> to vector<1x128xf32>
    %cst_12 = arith.constant 8.000000e+00 : f32
    %12 = vector.broadcast %cst_12 : f32 to vector<1x128xf32>
    %13 = arith.divf %11, %12 : vector<1x128xf32>
    %14 = vector.broadcast %13 : vector<1x128xf32> to vector<8x128xf32>
    %15 = arith.subf %9, %14 : vector<8x128xf32>
    %16 = arith.mulf %15, %15 : vector<8x128xf32>
    %cst_13 = arith.constant dense<0.000000e+00> : vector<128xf32>
    %17 = vector.multi_reduction <add>, %16, %cst_13 [0] : vector<8x128xf32> to vector<128xf32>
    %18 = vector.shape_cast %17 : vector<128xf32> to vector<1x128xf32>
    %cst_14 = arith.constant 8.000000e+00 : f32
    %19 = vector.broadcast %cst_14 : f32 to vector<1x128xf32>
    %20 = arith.divf %18, %19 : vector<1x128xf32>
    %21 = vector.extract_strided_slice %0 {offsets = [2, 0], sizes = [1, 128], strides = [1, 1]} : vector<8x256xf32> to vector<1x128xf32>
    %22 = vector.extract_strided_slice %0 {offsets = [2, 128], sizes = [1, 128], strides = [1, 1]} : vector<8x256xf32> to vector<1x128xf32>
    %cst_15 = arith.constant 9.99999974E-6 : f32
    %23 = vector.broadcast %cst_15 : f32 to vector<1x128xf32>
    %24 = arith.addf %20, %23 : vector<1x128xf32>
    %25 = math.rsqrt %24 : vector<1x128xf32>
    %26 = arith.mulf %21, %25 : vector<1x128xf32>
    %27 = vector.broadcast %26 : vector<1x128xf32> to vector<8x128xf32>
    %28 = arith.mulf %15, %27 : vector<8x128xf32>
    %29 = vector.broadcast %22 : vector<1x128xf32> to vector<8x128xf32>
    %30 = arith.addf %28, %29 : vector<8x128xf32>
    %cst_16 = arith.constant 0.000000e+00 : f32
    %31 = vector.broadcast %cst_16 : f32 to vector<8x128xf32>
    %32 = arith.maximumf %30, %31 : vector<8x128xf32>
    %33 = arith.truncf %32 : vector<8x128xf32> to vector<8x128xbf16>
    %c0_17 = arith.constant 0 : index
    %c0_18 = arith.constant 0 : index
    %34 = vector.load %arg5[%c0_17, %c0_18] : memref<8x256xbf16, #tpu.memory_space<vmem>>, vector<8x128xbf16>
    tpu.vector_store %arg5[%c0_17, %c0_18], %33 {strides = array<i32>} : memref<8x256xbf16, #tpu.memory_space<vmem>>, vector<8x128xbf16>,
    %c16 = arith.constant 16 : index
    %c0_19 = arith.constant 0 : index
    %35 = vector.load %arg2[%c16, %c0_19] : memref<272x256xbf16, #tpu.memory_space<vmem>>, vector<256x256xbf16>
    %c0_20 = arith.constant 0 : index
    %c0_21 = arith.constant 0 : index
    %36 = vector.load %arg5[%c0_20, %c0_21] : memref<8x256xbf16, #tpu.memory_space<vmem>>, vector<8x256xbf16>
    %cst_22 = arith.constant dense<0.000000e+00> : vector<8x256xf32>
    %37 = tpu.matmul %36, %35, %cst_22 {dimension_numbers = #tpu.dot_dimension_numbers<[1], [0], [0], [1], [0, 0, 1, 1], [], []>} : vector<8x256xbf16>, vector<256x256xbf16>, vector<8x256xf32> -> vector<8x256xf32>
    %38 = vector.extract_strided_slice %0 {offsets = [0, 0], sizes = [1, 256], strides = [1, 1]} : vector<8x256xf32> to vector<1x256xf32>
    %39 = vector.broadcast %38 : vector<1x256xf32> to vector<8x256xf32>
    %40 = arith.addf %37, %39 : vector<8x256xf32>
    %cst_23 = arith.constant 0.000000e+00 : f32
    %41 = vector.broadcast %cst_23 : f32 to vector<8x256xf32>
    %42 = arith.maximumf %40, %41 : vector<8x256xf32>
    %43 = vector.extract_strided_slice %0 {offsets = [1, 0], sizes = [1, 256], strides = [1, 1]} : vector<8x256xf32> to vector<1x256xf32>
    %44 = vector.broadcast %43 : vector<1x256xf32> to vector<8x256xf32>
    %45 = arith.mulf %42, %44 : vector<8x256xf32>
    %cst_24 = arith.constant dense<0.000000e+00> : vector<8xf32>
    %46 = vector.multi_reduction <add>, %45, %cst_24 [1] : vector<8x256xf32> to vector<8xf32>
    %47 = vector.shape_cast %46 : vector<8xf32> to vector<8x1xf32>
    %48 = vector.extract_strided_slice %0 {offsets = [3, 0], sizes = [1, 1], strides = [1, 1]} : vector<8x256xf32> to vector<1x1xf32>
    %49 = vector.broadcast %48 : vector<1x1xf32> to vector<8x1xf32>
    %50 = arith.addf %47, %49 : vector<8x1xf32>
    %c0_25 = arith.constant 0 : index
    %c0_26 = arith.constant 0 : index
    %51 = vector.load %arg4[%c0_25, %c0_26] : memref<8x1xf32, #tpu.memory_space<vmem>>, vector<8x1xf32>
    tpu.vector_store %arg4[%c0_25, %c0_26], %50 {strides = array<i32>} : memref<8x1xf32, #tpu.memory_space<vmem>>, vector<8x1xf32>,
    return
  }
}

</mosaic_0001>

<bundles_post_ra>
// kernel: tpu_custom_call.1
= control target key start
LH: loop header
LB: loop body
LE: loop exit
PB: predicated region body
PF: predicated region fallthrough
CT: control target
= control target key end

     0   :  { %9 = vsyncpa [#allocation4], 0  ;;  %s642_s0 = inlined_call_operand.hbm [shape: f32[8,16], index: 0, kind: input, shape index: {}]   ;;  %s643_s1 = inlined_call_operand.vmem [shape: f32[8,4], index: 1, kind: input, shape index: {}]   ;;  %s644_s2 = inlined_call_operand.hbm [shape: bf16[272,256], index: 2, kind: input, shape index: {}]   ;;  %s645_s3 = inlined_call_operand.vmem [shape: f32[8,256], index: 3, kind: input, shape index: {}]   ;;  %s646_s4 = inlined_call_operand.vmem [shape: f32[8,1], index: 4, kind: output, shape index: {}]  }
   0x1   :  { %10 = vsyncpa [#allocation6], 0  ;;  %s567_s15 = smov [#allocation3]   ;;  %s568_s17 = smov [#allocation5]  }
   0x2   :  { %s17_s16 = sshll.u32 %s567_s15, 4  ;;  %s28_s18 = sshll.u32 %s568_s17, 4  ;;  %s18_s16 = int_to_ptr.vmem [resolvable:$true] %s17_s16  ;;  %s599_s18 = int_to_ptr.vmem [resolvable:$true] %s28_s18 }
   0x3   :  { %s519_s21 = scalar_lea.hbm %s642_s0, 128 }
   0x4   :  { %p520_p0 = scmp.ne.s32.totalorder %s642_s0, %s519_s21  ;;  %p523_p1 = scmp.lt.u32.totalorder %s519_s21, %s642_s0 }
   0x6   :  { %p525_p2 = pnand %p523_p1, %p520_p0 }
   0x8   :  { %528 = shalt.err (!%p525_p2)
}
   0x9   :  { %s529_s26 = scalar_lea.vmem %s18_s16, 128  ;;  %p534_p4 = scmp.lt.s32.totalorder %s18_s16, %s18_s16 }
   0xa   :  { %p530_p3 = scmp.ne.s32.totalorder %s18_s16, %s529_s26  ;;  %p535_p5 = scmp.lt.s32.totalorder %s529_s26, %s529_s26 }
   0xc   :  { %p536_p6 = por %p535_p5, %p534_p4 }
   0xe   :  { %p537_p7 = pnand %p536_p6, %p530_p3 }
  0x10   :  { %540 = shalt.err (!%p537_p7)
}
  0x11   :  { %20 = dma.hbm_to_vmem [thread:$0]  %s642_s0, 128, %s18_s16, [#allocation4]  }
  0x12   :  { %s541_s5 = scalar_lea.hbm %s644_s2, 4352 }
  0x13   :  { %p542_p8 = scmp.ne.s32.totalorder %s644_s2, %s541_s5  ;;  %p545_p9 = scmp.lt.u32.totalorder %s541_s5, %s644_s2 }
  0x15   :  { %p547_p10 = pnand %p545_p9, %p542_p8 }
  0x17   :  { %550 = shalt.err (!%p547_p10)
}
  0x18   :  { %s551_s10 = scalar_lea.vmem %s599_s18, 4352  ;;  %p556_p12 = scmp.lt.s32.totalorder %s599_s18, %s599_s18 }
  0x19   :  { %p552_p11 = scmp.ne.s32.totalorder %s599_s18, %s551_s10  ;;  %p557_p13 = scmp.lt.s32.totalorder %s551_s10, %s551_s10 }
  0x1b   :  { %p558_p0 = por %p557_p13, %p556_p12 }
  0x1d   :  { %p559_p1 = pnand %p558_p0, %p552_p11 }
  0x1f   :  { %562 = shalt.err (!%p559_p1)
}
  0x20   :  { %s569_s0 = smov 128   ;;  %s570_s11 = smov 8  }
  0x21   :  { %34 = dma.hbm_to_vmem [thread:$0]  %s644_s2, 4352, %s599_s18, [#allocation6], %s569_s0, %s569_s0, %s570_s11  }
  0x22   :  { %563 = dma.done.wait [#allocation4], 128  }
  0x23   :  { %564 = vsyncadd [#allocation4], 4294967168 }
  0x24   :  { %565 = dma.done.wait [#allocation6], 4352  }
  0x25   :  { %566 = vsyncadd [#allocation6], 4294962944  ;;  %v571_v0 = vmov 0.0   ;;  %vm572_vm0 = vmmov 0   ;;  %v466_v1 = vld [vmem:[#allocation5] ss:$8 sps:$4 sm:$0xff]   ;;  %v125_v60 = vlaneseq }
  0x26   :  { %453 = vmatprep.subr.bf16.mxu0 %v571_v0  ;;  %455 = vmatprep.mubr.msk.bf16.mxu0 %vm572_vm0, %v571_v0  ;;  %v53_v2 = vld [vmem:[#allocation3] sm:$0xff]  ;;  %vm61_vm1 = vcmask 130048   ;;  %v470_v6 = vld [vmem:[#allocation5 + $0x24] ss:$8 sps:$4 sm:$0xff]   ;;  %v472_v7 = vld [vmem:[#allocation5 + $0x20] ss:$8 sps:$4 sm:$0xff]  }
  0x27   :  { %454 = vmatpush3.bf16.msra.mxu0 %v466_v1  ;;  %v54_v3 = vpack.c.bf16 %v53_v2, %v53_v2  ;;  %v467_v4 = vld [vmem:[#allocation5 + $0x14] ss:$8 sps:$4 sm:$0xff]   ;;  %v469_v5 = vld [vmem:[#allocation5 + $0x10] ss:$8 sps:$4 sm:$0xff]   ;;  %v476_v10 = vld [vmem:[#allocation5 + $0x44] ss:$8 sps:$4 sm:$0xff]  }
  0x28   :  { %346 = vmatprep.subr.bf16.mxu1 %v467_v4  ;;  %v473_v8 = vld [vmem:[#allocation5 + $0x34] ss:$8 sps:$4 sm:$0xff]   ;;  %v475_v9 = vld [vmem:[#allocation5 + $0x30] ss:$8 sps:$4 sm:$0xff]   ;;  %v478_v11 = vld [vmem:[#allocation5 + $0x40] ss:$8 sps:$4 sm:$0xff]  }
  0x29   :  { %347 = vmatpush1.bf16.msra.mxu1 %v469_v5  ;;  %v479_v12 = vld [vmem:[#allocation5 + $0x54] ss:$8 sps:$4 sm:$0xff]   ;;  %v481_v13 = vld [vmem:[#allocation5 + $0x50] ss:$8 sps:$4 sm:$0xff]   ;;  %v482_v14 = vld [vmem:[#allocation5 + $0x64] ss:$8 sps:$4 sm:$0xff]  }
  0x2a   :  { %456 = vmatmul.mubr.msk.bf16.vlgmr.msra.gmra.mrb[0].mxu0 %vm61_vm1, %v54_v3  ;;  %348 = vmatprep.subr.bf16.mxu1 %v470_v6  ;;  %v484_v15 = vld [vmem:[#allocation5 + $0x60] ss:$8 sps:$4 sm:$0xff]   ;;  %v485_v16 = vld [vmem:[#allocation5 + $0x74] ss:$8 sps:$4 sm:$0xff]   ;;  %v487_v17 = vld [vmem:[#allocation5 + $0x70] ss:$8 sps:$4 sm:$0xff]  }
  0x2b   :  { %v488_v18 = vld [vmem:[#allocation5 + $0x84] ss:$8 sps:$4 sm:$0xff]   ;;  %v490_v19 = vld [vmem:[#allocation5 + $0x80] ss:$8 sps:$4 sm:$0xff]   ;;  %v491_v20 = vld [vmem:[#allocation5 + $0x94] ss:$8 sps:$4 sm:$0xff]  }
  0x2c   :  { %v493_v21 = vld [vmem:[#allocation5 + $0x90] ss:$8 sps:$4 sm:$0xff]   ;;  %v494_v22 = vld [vmem:[#allocation5 + $0xa4] ss:$8 sps:$4 sm:$0xff]   ;;  %v496_v23 = vld [vmem:[#allocation5 + $0xa0] ss:$8 sps:$4 sm:$0xff]  }
  0x2d   :  { %349 = vmatpush1.bf16.msra.mxu1 %v472_v7  ;;  %v497_v24 = vld [vmem:[#allocation5 + $0xb4] ss:$8 sps:$4 sm:$0xff]   ;;  %v499_v25 = vld [vmem:[#allocation5 + $0xb0] ss:$8 sps:$4 sm:$0xff]   ;;  %v500_v26 = vld [vmem:[#allocation5 + $0xc4] ss:$8 sps:$4 sm:$0xff]  }
  0x2e   :  { %350 = vmatprep.subr.bf16.mxu1 %v473_v8  ;;  %v502_v27 = vld [vmem:[#allocation5 + $0xc0] ss:$8 sps:$4 sm:$0xff]   ;;  %v503_v28 = vld [vmem:[#allocation5 + $0xd4] ss:$8 sps:$4 sm:$0xff]   ;;  %v505_v29 = vld [vmem:[#allocation5 + $0xd0] ss:$8 sps:$4 sm:$0xff]  }
  0x2f   :  { %v506_v30 = vld [vmem:[#allocation5 + $0xe4] ss:$8 sps:$4 sm:$0xff]   ;;  %v47_v31 = vld [vmem:[%s643_s1] sm:$0xff]  ;;  %v508_v32 = vld [vmem:[#allocation5 + $0xe0] ss:$8 sps:$4 sm:$0xff]   ;;  %v573_v34 = vmov 0  }
  0x30   :  { %v48_v33 = vpack.c.bf16 %v47_v31, %v47_v31  ;;  %46 = vst [vmem:[#allocation2 + $0x4] sm:$0xf] %v573_v34  ;;  %vm49_vm2 = vcmask 27648   ;;  %v509_v35 = vld [vmem:[#allocation5 + $0xf4] ss:$8 sps:$4 sm:$0xff]   ;;  %v126_v61 = vshrl.u32 %v125_v60, 7 }
  0x31   :  { %351 = vmatpush1.bf16.msra.mxu1 %v475_v9  ;;  %v511_v36 = vld [vmem:[#allocation5 + $0xf0] ss:$8 sps:$4 sm:$0xff]   ;;  %v512_v37 = vld [vmem:[#allocation5 + $0x104] ss:$8 sps:$4 sm:$0xff]   ;;  %v514_v38 = vld [vmem:[#allocation5 + $0x100] ss:$8 sps:$4 sm:$0xff]  }
  0x32   :  { %352 = vmatprep.subr.bf16.mxu1 %v476_v10  ;;  %50 = vst.msk [vmem:[#allocation2 + $0x4] sm:$0xf] %vm49_vm2, %v48_v33  ;;  %v44_v62 = vld [vmem:[%s645_s3] sm:$0xff]  ;;  %v127_v63 = vsub.s32 2, %v126_v61  ;;  %v45_v1 = vld [vmem:[%s645_s3 + $0x8] sm:$0xff]  ;;  %vm407_vm3 = vcmask 7168  }
  0x34   :  { %v133_v4 = vrot.slane %v45_v1, %v127_v63 }
  0x35   :  { %353 = vmatpush1.bf16.msra.mxu1 %v478_v11 }
  0x36   :  { %354 = vmatprep.subr.bf16.mxu1 %v479_v12  ;;  %v173_v12 = vsub.s32 0, %v126_v61 }
  0x39   :  { %355 = vmatpush1.bf16.msra.mxu1 %v481_v13  ;;  %v174_v13 = vrot.slane %v44_v62, %v173_v12 }
  0x3a   :  { %356 = vmatprep.subr.bf16.mxu1 %v482_v14  ;;  %v391_v14 = vsub.s32 1, %v126_v61 }
  0x3d   :  { %357 = vmatpush1.bf16.msra.mxu1 %v484_v15  ;;  %v178_v15 = vrot.slane %v45_v1, %v173_v12 }
  0x3e   :  { %358 = vmatprep.subr.bf16.mxu1 %v485_v16 }
  0x41   :  { %359 = vmatpush1.bf16.msra.mxu1 %v487_v17 }
  0x42   :  { %360 = vmatprep.subr.bf16.mxu1 %v488_v18 }
  0x45   :  { %361 = vmatpush1.bf16.msra.mxu1 %v490_v19  ;;  %v392_v19 = vrot.slane %v44_v62, %v391_v14 }
  0x46   :  { %362 = vmatprep.subr.bf16.mxu1 %v491_v20 }
  0x49   :  { %363 = vmatpush1.bf16.msra.mxu1 %v493_v21 }
  0x4a   :  { %364 = vmatprep.subr.bf16.mxu1 %v494_v22  ;;  %v396_v22 = vrot.slane %v45_v1, %v391_v14 }
  0x4d   :  { %365 = vmatpush1.bf16.msra.mxu1 %v496_v23 }
  0x4e   :  { %366 = vmatprep.subr.bf16.mxu1 %v497_v24 }
  0x51   :  { %367 = vmatpush1.bf16.msra.mxu1 %v499_v25 }
  0x52   :  { %368 = vmatprep.subr.bf16.mxu1 %v500_v26 }
  0x55   :  { %369 = vmatpush1.bf16.msra.mxu1 %v502_v27 }
  0x56   :  { %370 = vmatprep.subr.bf16.mxu1 %v503_v28 }
  0x59   :  { %371 = vmatpush1.bf16.msra.mxu1 %v505_v29  ;;  %v404_v29 = vsub.s32 3, %v126_v61 }
  0x5a   :  { %372 = vmatprep.subr.bf16.mxu1 %v506_v30 }
  0x5b   :  { %v405_v30 = vrot.slane %v44_v62, %v404_v29 }
  0x5d   :  { %373 = vmatpush1.bf16.msra.mxu1 %v508_v32 }
  0x5e   :  { %374 = vmatprep.subr.bf16.mxu1 %v509_v35 }
  0x61   :  { %375 = vmatpush1.bf16.msra.mxu1 %v511_v36 }
  0x62   :  { %376 = vmatprep.subr.bf16.mxu1 %v512_v37 }
  0x65   :  { %377 = vmatpush1.bf16.msra.mxu1 %v514_v38 }
  0xfd   :  { %v99_v39 = vpop.f32.mrb[0].mxu0 }
  0xfe   :  { %v105_v40 = vrot.slane %v99_v39, 4  ;;  %v457_v41 = vpop.f32.mrb[1].mxu0 }
  0xff   :  { %v102_v42 = vpop.f32.mrb[2].mxu0 }
 0x100   :  { %v106_v43 = vadd.f32 %v105_v40, %v99_v39  ;;  %v458_v44 = vpop.f32.mrb[3].mxu0 }
 0x102   :  { %v107_v45 = vrot.slane %v106_v43, 2 }
 0x104   :  { %v108_v46 = vadd.f32 %v107_v45, %v106_v43 }
 0x106   :  { %v109_v47 = vrot.slane %v108_v46, 1 }
 0x108   :  { %v110_v48 = vadd.f32 %v109_v47, %v108_v46 }
 0x10a   :  { %v112_v49 = vmul.f32 0.125, %v110_v48 }
 0x10c   :  { %v113_v50 = vsub.f32 %v99_v39, %v112_v49 }
 0x10e   :  { %v114_v51 = vmul.f32 %v113_v50, %v113_v50 }
 0x110   :  { %v115_v52 = vrot.slane %v114_v51, 4 }
 0x112   :  { %v116_v53 = vadd.f32 %v115_v52, %v114_v51 }
 0x114   :  { %v117_v54 = vrot.slane %v116_v53, 2 }
 0x116   :  { %v118_v55 = vadd.f32 %v117_v54, %v116_v53 }
 0x118   :  { %v119_v56 = vrot.slane %v118_v55, 1 }
 0x11a   :  { %v120_v57 = vadd.f32 %v119_v56, %v118_v55 }
 0x11c   :  { %v121_v58 = vmul.f32 0.125, %v120_v57 }
 0x11e   :  { %v122_v59 = vadd.f32 1e-05, %v121_v58 }
 0x120   :  { %517 = vrsqrt.f32 %v122_v59 }
 0x12a   :  { %v518_v0 = vpop.eup %517 }
 0x12b   :  { %v124_v2 = vmul.f32 %v518_v0, %v44_v62 }
 0x12d   :  { %v128_v3 = vrot.slane %v124_v2, %v127_v63 }
 0x12f   :  { %v129_v5 = vmul.f32 %v128_v3, %v113_v50 }
 0x131   :  { %v134_v6 = vadd.f32 %v133_v4, %v129_v5 }
 0x133   :  { %v135_v7 = vmax.f32 %v134_v6, 0.0 }
 0x135   :  { %v136_v8 = vpack.c.bf16 %v135_v7, %v135_v7 }
 0x137   :  { %137 = vst [vmem:[#allocation2] sm:$0xf] %v136_v8 }
 0x13e   :  { %v170_v9 = vld [vmem:[#allocation2] sm:$0xff] }
 0x13f   :  { %v417_v10 = vcombine.low %v170_v9, %v170_v9  ;;  %v418_v11 = vcombine.high %v170_v9, %v170_v9 }
 0x141   :  { %378 = vmatprep.mubr.bf16.mxu1 %v418_v11 }
 0x142   :  { %379 = vmatmul.mubr.bf16.vlgmr.msra.gmra.mrb[0].mxu1 %v417_v10 }
 0x215   :  { %v380_v16 = vpop.f32.mrb[0].mxu1 }
 0x216   :  { %v381_v17 = vadd.f32 %v380_v16, %v174_v13  ;;  %v382_v18 = vpop.f32.mrb[1].mxu1 }
 0x217   :  { %v383_v20 = vadd.f32 %v382_v18, %v178_v15  ;;  %v384_v21 = vpop.f32.mrb[2].mxu1 }
 0x218   :  { %v387_v23 = vmax.f32 %v381_v17, 0.0  ;;  %v385_v24 = vpop.f32.mrb[3].mxu1 }
 0x219   :  { %v388_v25 = vmax.f32 %v383_v20, 0.0 }
 0x21a   :  { %v397_v26 = vmul.f32 %v392_v19, %v387_v23 }
 0x21b   :  { %v398_v27 = vmul.f32 %v396_v22, %v388_v25 }
 0x21d   :  { %v399_v28 = vadd.f32 %v398_v27, %v397_v26 }
 0x21f   :  { %400 = vadd.xlane.f32.xlu0 %v399_v28 }
 0x2ac   :  { %v401_v31 = vpop.xlane.xlu0 %400 }
 0x2ad   :  { %v406_v32 = vadd.f32 %v405_v30, %v401_v31 }
 0x2af   :  { %408 = vst.msk [vmem:[%s646_s4] sm:$0xff] %vm407_vm3, %v406_v32 }
 0x2b0   :  { %413 = vsyncpa [#allocation4], 1 }
 0x2b1   :  { %414 = vsyncpa [#allocation6], 1 }

</bundles_post_ra>
